<compile_context>
chip_gen: v5e
topology: v5e:2x2
jax: 0.10.0
libtpu: 0.0.40
codegen_flags: <defaults>
</compile_context>

<pallas_src>
import functools
import numpy as np
import jax
import jax.numpy as jnp
from jax.experimental import pallas as pl
from jax.experimental.pallas import tpu as pltpu

_LANE = 128
_SUBLANE = 8


def _round_up(x, m):
    return ((x + m - 1) // m) * m


def _vmem_limit_bytes():
    """Generation-aware scoped-VMEM budget: half of physical VMEM, capped at 64 MiB.

    128 MiB parts (v5e/v6e) -> 64 MiB; 64 MiB parts (v7x) -> 32 MiB.
    """
    try:
        cap = int(getattr(pltpu.get_tpu_info(), "vmem_capacity_bytes", 128 << 20))
    except Exception:
        cap = 128 << 20
    return max(16 << 20, min(64 << 20, cap // 2))


_VMEM_LIMIT = _vmem_limit_bytes()
# Target bytes for one x tile: leaves room for double-buffered in/out blocks plus f32
# intermediates under the scoped limit on every generation (2 MiB @ 32 MiB, 4 MiB @ 64 MiB).
_BLOCK_TARGET = max(1 << 20, _VMEM_LIMIT // 16)


def _compiler_params(dim_sems):
    return pltpu.CompilerParams(
        dimension_semantics=dim_sems,
        vmem_limit_bytes=_VMEM_LIMIT,
    )


def _pad_cols(a, d_pad):
    """Zero-pad the last (lane) dim to a multiple of 128 so kernel stores are lane-dense."""
    d = a.shape[-1]
    if d == d_pad:
        return a
    return jnp.pad(a, [(0, 0)] * (a.ndim - 1) + [(0, d_pad - d)])


def _row_tile_1d(n, row_bytes, target_bytes=_BLOCK_TARGET):
    """Row tile for the 1-D (layernorm) grid: multiple of 8 sublanes, ~target bytes."""
    tm = (target_bytes // max(row_bytes, 1)) // _SUBLANE * _SUBLANE
    tm = max(_SUBLANE, min(tm, 2048, _round_up(n, _SUBLANE)))
    # Give the second v7x TensorCore work when a single tile would cover all rows.
    if tm >= n and n > _SUBLANE:
        tm = max(_SUBLANE, _round_up((n + 1) // 2, _SUBLANE))
    return tm


def _tile_2d(n, d_pad, target_bytes=_BLOCK_TARGET, max_td=512):
    """(row, feature) tiles for the 2-D grids; feature tile is lane-dense (mult of 128)."""
    td = min(d_pad, max_td)
    if td == d_pad and d_pad >= 2 * _LANE:
        td = _round_up(d_pad // 2, _LANE)      # >= 2 feature tiles -> v7x dual-TC work
    tm = (target_bytes // max(td * 4, 1)) // _SUBLANE * _SUBLANE
    tm = max(_SUBLANE, min(tm, 2048, _round_up(n, _SUBLANE)))
    return tm, td


# ----------------------------------------------------------------------------
# Kernels
# ----------------------------------------------------------------------------
def _layernorm_kernel(x_ref, w_ref, b_ref, o_ref, *, inv_d):
    """Fused single-pass LayerNorm on a row tile [TM, Dp] (eps=1e-5, affine).

    Padded feature columns are zero, so sums are exact when divided by the true D.
    """
    x = x_ref[...].astype(jnp.float32)
    s = jnp.sum(x, axis=-1, keepdims=True)
    ss = jnp.sum(x * x, axis=-1, keepdims=True)
    mean = s * inv_d
    var = jnp.maximum(ss * inv_d - mean * mean, 0.0)
    xhat = (x - mean) * jax.lax.rsqrt(var + 1e-5)
    o_ref[...] = (xhat * w_ref[...] + b_ref[...]).astype(o_ref.dtype)


def _bn_stats_kernel(x_ref, s_ref, ss_ref, *, tm, n_rows):
    """Per-feature sum / sum-of-squares accumulation over row tiles.

    grid = (feature tiles [parallel], row tiles [arbitrary]); outputs (1, TD) stay
    resident across the row axis.  Rows past N (partial last tile) are masked to 0.
    """
    i = pl.program_id(1)

    @pl.when(i == 0)
    def _init():
        s_ref[...] = jnp.zeros_like(s_ref)
        ss_ref[...] = jnp.zeros_like(ss_ref)

    x = x_ref[...].astype(jnp.float32)
    rows = i * tm + jax.lax.broadcasted_iota(jnp.int32, (tm, 1), 0)
    x = jnp.where(rows < n_rows, x, 0.0)
    s_ref[...] += jnp.sum(x, axis=0, keepdims=True)
    ss_ref[...] += jnp.sum(x * x, axis=0, keepdims=True)


def _affine_apply_kernel(x_ref, scale_ref, off_ref, o_ref):
    """out = x * scale + offset on a [TM, TD] tile (batchnorm normalize pass)."""
    o_ref[...] = (x_ref[...] * scale_ref[...] + off_ref[...]).astype(o_ref.dtype)


def _gn_stats_kernel(seg_ref, x_ref, sx_ref, sxx_ref, *, tm, n_rows, n_graphs):
    """GraphNorm sufficient statistics Sx, Sxx at [B, TD], accumulated over row tiles.

    one_hot is built per row tile in the input dtype (bf16-friendly MXU operands);
    accumulation is f32.  Rows past N are masked to 0 so garbage never reaches Sx/Sxx.
    """
    i = pl.program_id(1)

    @pl.when(i == 0)
    def _init():
        sx_ref[...] = jnp.zeros_like(sx_ref)
        sxx_ref[...] = jnp.zeros_like(sxx_ref)

    x = x_ref[...]
    rows = i * tm + jax.lax.broadcasted_iota(jnp.int32, (tm, 1), 0)
    x = jnp.where(rows < n_rows, x, 0).astype(x.dtype)               # [TM, TD]
    gids = jax.lax.broadcasted_iota(jnp.int32, (tm, n_graphs), 1)     # [TM, B]
    one_hot = (seg_ref[...] == gids).astype(x.dtype)                  # [TM, B]
    sx_ref[...] += jnp.einsum("nb,nd->bd", one_hot, x,
                              preferred_element_type=jnp.float32)
    sxx_ref[...] += jnp.einsum("nb,nd->bd", one_hot, x * x,
                               preferred_element_type=jnp.float32)


def _gn_apply_kernel(seg_ref, x_ref, scale_ref, shift_ref, b_ref, o_ref, *, n_graphs):
    """GraphNorm apply: out = x * scale[seg] - shift[seg] + bias on a [TM, TD] tile.

    The per-graph -> per-node broadcast is done with small [TM,B]x[B,TD] matmuls.
    """
    x = x_ref[...]
    gids = jax.lax.broadcasted_iota(jnp.int32, (x.shape[0], n_graphs), 1)
    one_hot = (seg_ref[...] == gids).astype(x.dtype)                  # [TM, B]
    scale_n = jnp.dot(one_hot, scale_ref[...], preferred_element_type=jnp.float32)
    shift_n = jnp.dot(one_hot, shift_ref[...], preferred_element_type=jnp.float32)
    o_ref[...] = (x * scale_n - shift_n + b_ref[...]).astype(o_ref.dtype)


# ----------------------------------------------------------------------------
# Wrappers
# ----------------------------------------------------------------------------
def layernorm(x, weight, bias):
    n, d = x.shape
    d_pad = _round_up(d, _LANE)
    xp = _pad_cols(x, d_pad)
    wp = _pad_cols(weight.reshape(1, d), d_pad)
    bp = _pad_cols(bias.reshape(1, d), d_pad)

    tm = _row_tile_1d(n, d_pad * 4)
    out = pl.pallas_call(
        functools.partial(_layernorm_kernel, inv_d=1.0 / d),
        out_shape=jax.ShapeDtypeStruct((n, d_pad), x.dtype),
        grid=(pl.cdiv(n, tm),),
        in_specs=[
            pl.BlockSpec((tm, d_pad), lambda i: (i, 0)),
            pl.BlockSpec((1, d_pad), lambda i: (0, 0)),
            pl.BlockSpec((1, d_pad), lambda i: (0, 0)),
        ],
        out_specs=pl.BlockSpec((tm, d_pad), lambda i: (i, 0)),
        compiler_params=_compiler_params(("parallel",)),
    )(xp, wp, bp)
    return out[:, :d] if d_pad != d else out


def batchnorm(x, weight, bias):
    """Training-mode BatchNorm1d (biased batch statistics, eps=1e-5)."""
    n, d = x.shape
    d_pad = _round_up(d, _LANE)
    xp = _pad_cols(x, d_pad)
    wp = _pad_cols(weight.reshape(1, d), d_pad).astype(jnp.float32)
    bp = _pad_cols(bias.reshape(1, d), d_pad).astype(jnp.float32)

    tm, td = _tile_2d(n, d_pad)
    nd, nn = pl.cdiv(d_pad, td), pl.cdiv(n, tm)

    # Pass 1: per-feature sum / sum-of-squares, reduced over row tiles.
    s, ss = pl.pallas_call(
        functools.partial(_bn_stats_kernel, tm=tm, n_rows=n),
        out_shape=(jax.ShapeDtypeStruct((1, d_pad), jnp.float32),
                   jax.ShapeDtypeStruct((1, d_pad), jnp.float32)),
        grid=(nd, nn),
        in_specs=[pl.BlockSpec((tm, td), lambda j, i: (i, j))],
        out_specs=(pl.BlockSpec((1, td), lambda j, i: (0, j)),
                   pl.BlockSpec((1, td), lambda j, i: (0, j))),
        compiler_params=_compiler_params(("parallel", "arbitrary")),
    )(xp)

    # Tiny (1, D) epilogue in plain JAX: fold mean/var/weight/bias into scale/offset.
    inv_n = 1.0 / n
    mean = s * inv_n
    var = jnp.maximum(ss * inv_n - mean * mean, 0.0)
    scale = wp * jax.lax.rsqrt(var + 1e-5)
    offset = bp - mean * scale

    # Pass 2: fully parallel fused multiply-add.
    out = pl.pallas_call(
        _affine_apply_kernel,
        out_shape=jax.ShapeDtypeStruct((n, d_pad), x.dtype),
        grid=(nd, nn),
        in_specs=[
            pl.BlockSpec((tm, td), lambda j, i: (i, j)),
            pl.BlockSpec((1, td), lambda j, i: (0, j)),
            pl.BlockSpec((1, td), lambda j, i: (0, j)),
        ],
        out_specs=pl.BlockSpec((tm, td), lambda j, i: (i, j)),
        compiler_params=_compiler_params(("parallel", "parallel")),
    )(xp, scale, offset)
    return out[:, :d] if d_pad != d else out


def graphnorm(x, seg, cnt, weight, bias, mean_scale):
    n, d = x.shape
    bsz = cnt.shape[0]
    d_pad = _round_up(d, _LANE)
    xp = _pad_cols(x, d_pad)
    wp = _pad_cols(weight.reshape(1, d), d_pad).astype(jnp.float32)
    bp = _pad_cols(bias.reshape(1, d), d_pad).astype(jnp.float32)
    msp = _pad_cols(mean_scale.reshape(1, d), d_pad).astype(jnp.float32)

    tm, td = _tile_2d(n, d_pad)
    nd, nn = pl.cdiv(d_pad, td), pl.cdiv(n, tm)

    # Pass 1: segment sufficient statistics Sx, Sxx at [B, D].
    sx, sxx = pl.pallas_call(
        functools.partial(_gn_stats_kernel, tm=tm, n_rows=n, n_graphs=bsz),
        out_shape=(jax.ShapeDtypeStruct((bsz, d_pad), jnp.float32),
                   jax.ShapeDtypeStruct((bsz, d_pad), jnp.float32)),
        grid=(nd, nn),
        in_specs=[
            pl.BlockSpec((tm, 1), lambda j, i: (i, 0)),     # seg ids (per row tile)
            pl.BlockSpec((tm, td), lambda j, i: (i, j)),    # x
        ],
        out_specs=(pl.BlockSpec((bsz, td), lambda j, i: (0, j)),
                   pl.BlockSpec((bsz, td), lambda j, i: (0, j))),
        compiler_params=_compiler_params(("parallel", "arbitrary")),
    )(seg, xp)

    # Tiny [B, D] epilogue: mean, variance of (x - mean*mean_scale), fold weight via rsqrt.
    #   var = Sxx/cnt - mean^2 * ms * (2 - ms)      (exact expansion of E[(x - mean*ms)^2])
    inv_cnt = 1.0 / cnt                                       # [B, 1]
    mean = sx * inv_cnt                                       # [B, D]
    var = jnp.maximum(sxx * inv_cnt - mean * mean * msp * (2.0 - msp), 0.0)
    scale = wp * jax.lax.rsqrt(var + 1e-6)                    # [B, D]
    shift = mean * msp * scale                                # [B, D]

    # Pass 2: fully parallel per-node apply.
    out = pl.pallas_call(
        functools.partial(_gn_apply_kernel, n_graphs=bsz),
        out_shape=jax.ShapeDtypeStruct((n, d_pad), x.dtype),
        grid=(nd, nn),
        in_specs=[
            pl.BlockSpec((tm, 1), lambda j, i: (i, 0)),      # seg ids
            pl.BlockSpec((tm, td), lambda j, i: (i, j)),     # x
            pl.BlockSpec((bsz, td), lambda j, i: (0, j)),    # scale
            pl.BlockSpec((bsz, td), lambda j, i: (0, j)),    # shift
            pl.BlockSpec((1, td), lambda j, i: (0, j)),      # bias
        ],
        out_specs=pl.BlockSpec((tm, td), lambda j, i: (i, j)),
        compiler_params=_compiler_params(("parallel", "parallel")),
    )(seg, xp, scale, shift, bp)
    return out[:, :d] if d_pad != d else out


@functools.lru_cache(maxsize=128)
def _segments_for(batch_num_nodes):
    """Per-node graph ids and per-graph counts, built once per batch composition."""
    counts = np.asarray(batch_num_nodes, dtype=np.int64)
    bsz = counts.shape[0]
    seg = jnp.asarray(np.repeat(np.arange(bsz), counts), jnp.int32).reshape(-1, 1)
    cnt = jnp.asarray(counts, jnp.float32).reshape(bsz, 1)
    return seg, cnt


class Graph:
    def __init__(self, batch_num_nodes):
        self.batch_num_nodes = list(batch_num_nodes)


class NormLayer:
    """JAX/Pallas port of the PyTorch NormLayer (deterministic default init)."""

    def __init__(self, hidden_dim, norm_type):
        self.norm_type = norm_type
        self.hidden_dim = hidden_dim
        if norm_type in ("batchnorm", "layernorm", "graphnorm"):
            # PyTorch default inits: weight/gamma = 1, bias/beta = 0, mean_scale = 1
            self.weight = jnp.ones((hidden_dim,), jnp.float32)
            self.bias = jnp.zeros((hidden_dim,), jnp.float32)
            if norm_type == "graphnorm":
                self.mean_scale = jnp.ones((hidden_dim,), jnp.float32)
        else:
            raise NotImplementedError

    def __call__(self, graph, x):
        if self.norm_type == "batchnorm":
            return batchnorm(x, self.weight, self.bias)
        if self.norm_type == "layernorm":
            return layernorm(x, self.weight, self.bias)
        # graphnorm
        seg, cnt = _segments_for(tuple(graph.batch_num_nodes))
        return graphnorm(x, seg, cnt, self.weight, self.bias, self.mean_scale)


# ----------------------------------------------------------------------------
# Pure-JAX references (correctness gates)
# ----------------------------------------------------------------------------
def _graphnorm_ref(x, batch_num_nodes, weight, bias, mean_scale):
    counts = np.asarray(batch_num_nodes)
    bsz = counts.shape[0]
    seg = jnp.asarray(np.repeat(np.arange(bsz), counts), jnp.int32)
    cnt = jnp.asarray(counts, jnp.float32)[:, None]
    mean = jax.ops.segment_sum(x, seg, num_segments=bsz) / cnt
    sub = x - mean[seg] * mean_scale
    var = jax.ops.segment_sum(sub * sub, seg, num_segments=bsz) / cnt
    std = jnp.sqrt(var + 1e-6)
    return weight * sub / std[seg] + bias


def _layernorm_ref(x, weight, bias):
    mean = jnp.mean(x, axis=-1, keepdims=True)
    var = jnp.mean((x - mean) ** 2, axis=-1, keepdims=True)
    return (x - mean) / jnp.sqrt(var + 1e-5) * weight + bias


def _batchnorm_ref(x, weight, bias):
    mean = jnp.mean(x, axis=0, keepdims=True)
    var = jnp.mean((x - mean) ** 2, axis=0, keepdims=True)
    return (x - mean) / jnp.sqrt(var + 1e-5) * weight + bias


# ----------------------------------------------------------------------------
if __name__ == "__main__":
    def check(batch_num_nodes, hidden, seed):
        n = sum(batch_num_nodes)
        kx, kw, kb, km = jax.random.split(jax.random.PRNGKey(seed), 4)
        x = jax.random.normal(kx, (n, hidden), jnp.float32)
        w = 1.0 + 0.5 * jax.random.normal(kw, (hidden,), jnp.float32)
        b = 0.1 * jax.random.normal(kb, (hidden,), jnp.float32)
        ms = 1.0 + 0.3 * jax.random.normal(km, (hidden,), jnp.float32)
        graph = Graph(batch_num_nodes)

        # graphnorm (the custom hot path)
        gn = NormLayer(hidden, "graphnorm")
        gn.weight, gn.bias, gn.mean_scale = w, b, ms
        out = jax.block_until_ready(gn(graph, x))
        assert out.shape == (n, hidden) and out.dtype == x.dtype
        ref = _graphnorm_ref(x, batch_num_nodes, w, b, ms)
        np.testing.assert_allclose(np.asarray(out), np.asarray(ref), rtol=1e-4, atol=1e-4)

        # layernorm branch
        ln = NormLayer(hidden, "layernorm")
        ln.weight, ln.bias = w, b
        out = jax.block_until_ready(ln(graph, x))
        np.testing.assert_allclose(np.asarray(out), np.asarray(_layernorm_ref(x, w, b)),
                                   rtol=1e-4, atol=1e-4)

        # batchnorm branch (training-mode stats)
        bn = NormLayer(hidden, "batchnorm")
        bn.weight, bn.bias = w, b
        out = jax.block_until_ready(bn(graph, x))
        np.testing.assert_allclose(np.asarray(out), np.asarray(_batchnorm_ref(x, w, b)),
                                   rtol=1e-4, atol=1e-4)

    # tiny: D < 128 (padded to 128), single tiles
    check([5, 3], 32, seed=0)
    # padded D (200 -> 256), multiple feature tiles, partial row tiles (masking path)
    check([9, 17, 15], 200, seed=1)

    print("KERNEL_OK")
</pallas_src>

<mosaic_0001>
module attributes {stable_mosaic.version = 11 : i64} {
  func.func @_gn_stats_kernel(%arg0: i32, %arg1: i32, %arg2: memref<8x1xi32, #tpu.memory_space<vmem>>, %arg3: memref<8x128xf32, #tpu.memory_space<vmem>>, %arg4: memref<2x128xf32, #tpu.memory_space<vmem>>, %arg5: memref<2x128xf32, #tpu.memory_space<vmem>>) attributes {dimension_semantics = [#tpu.dimension_semantics<parallel>, #tpu.dimension_semantics<arbitrary>], iteration_bounds = array<i64: 1, 1>, scalar_prefetch = 0 : i64, scratch_operands = 0 : i64, tpu.core_type = #tpu.core_type<tc>, window_params = [{transform_indices = @transform_0, window_bounds = array<i64: 8, 1>}, {transform_indices = @transform_1, window_bounds = array<i64: 8, 128>}, {transform_indices = @transform_2, window_bounds = array<i64: 2, 128>}, {transform_indices = @transform_3, window_bounds = array<i64: 2, 128>}]} {
    %c0_i32 = arith.constant 0 : i32
    %0 = arith.cmpi eq, %arg1, %c0_i32 : i32
    %1 = arith.extui %0 : i1 to i32
    %c0_i32_0 = arith.constant 0 : i32
    %2 = arith.cmpi ne, %1, %c0_i32_0 : i32
    scf.if %2 {
      %cst_15 = arith.constant 0.000000e+00 : f32
      %30 = vector.broadcast %cst_15 : f32 to vector<2x128xf32>
      %c0_16 = arith.constant 0 : index
      %c0_17 = arith.constant 0 : index
      %31 = vector.load %arg4[%c0_16, %c0_17] : memref<2x128xf32, #tpu.memory_space<vmem>>, vector<2x128xf32>
      tpu.vector_store %arg4[%c0_16, %c0_17], %30 {strides = array<i32>} : memref<2x128xf32, #tpu.memory_space<vmem>>, vector<2x128xf32>,
      %cst_18 = arith.constant 0.000000e+00 : f32
      %32 = vector.broadcast %cst_18 : f32 to vector<2x128xf32>
      %c0_19 = arith.constant 0 : index
      %c0_20 = arith.constant 0 : index
      %33 = vector.load %arg5[%c0_19, %c0_20] : memref<2x128xf32, #tpu.memory_space<vmem>>, vector<2x128xf32>
      tpu.vector_store %arg5[%c0_19, %c0_20], %32 {strides = array<i32>} : memref<2x128xf32, #tpu.memory_space<vmem>>, vector<2x128xf32>,
    } else {
    }
    %c0 = arith.constant 0 : index
    %c0_1 = arith.constant 0 : index
    %3 = vector.load %arg3[%c0, %c0_1] : memref<8x128xf32, #tpu.memory_space<vmem>>, vector<8x128xf32>
    %c8_i32 = arith.constant 8 : i32
    %4 = arith.muli %arg1, %c8_i32 : i32
    %5 = tpu.iota {dimensions = array<i32: 0>} : vector<8x1xi32>
    %6 = vector.broadcast %4 : i32 to vector<8x1xi32>
    %7 = arith.addi %6, %5 : vector<8x1xi32>
    %c8_i32_2 = arith.constant 8 : i32
    %8 = vector.broadcast %c8_i32_2 : i32 to vector<8x1xi32>
    %9 = arith.cmpi slt, %7, %8 : vector<8x1xi32>
    %c0_i32_3 = arith.constant 0 : i32
    %10 = arith.sitofp %c0_i32_3 : i32 to f32
    %11 = vector.shape_cast %9 : vector<8x1xi1> to vector<8x1xi1>
    %12 = vector.broadcast %11 : vector<8x1xi1> to vector<8x128xi1>
    %13 = vector.broadcast %10 : f32 to vector<8x128xf32>
    %14 = arith.select %12, %3, %13 : vector<8x128xi1>, vector<8x128xf32>
    %15 = tpu.iota {dimensions = array<i32: 1>} : vector<8x2xi32>
    %c0_4 = arith.constant 0 : index
    %c0_5 = arith.constant 0 : index
    %16 = vector.load %arg2[%c0_4, %c0_5] : memref<8x1xi32, #tpu.memory_space<vmem>>, vector<8x1xi32>
    %17 = vector.broadcast %16 : vector<8x1xi32> to vector<8x2xi32>
    %18 = arith.cmpi eq, %17, %15 : vector<8x2xi32>
    %19 = arith.extui %18 : vector<8x2xi1> to vector<8x2xi32>
    %20 = arith.sitofp %19 : vector<8x2xi32> to vector<8x2xf32>
    %c0_6 = arith.constant 0 : index
    %c0_7 = arith.constant 0 : index
    %21 = vector.load %arg4[%c0_6, %c0_7] : memref<2x128xf32, #tpu.memory_space<vmem>>, vector<2x128xf32>
    "tpu.trace_start"() <{level = 10 : i32, message = "nb,nd->bd"}> : () -> ()
    %cst = arith.constant dense<0.000000e+00> : vector<2x128xf32>
    %22 = tpu.matmul %20, %14, %cst {dimension_numbers = #tpu.dot_dimension_numbers<[0], [0], [1], [1], [0, 1, 1, 1], [], []>} : vector<8x2xf32>, vector<8x128xf32>, vector<2x128xf32> -> vector<2x128xf32>
    "tpu.trace_stop"() : () -> ()
    %23 = arith.addf %21, %22 : vector<2x128xf32>
    %c0_8 = arith.constant 0 : index
    %c0_9 = arith.constant 0 : index
    %24 = vector.load %arg4[%c0_8, %c0_9] : memref<2x128xf32, #tpu.memory_space<vmem>>, vector<2x128xf32>
    tpu.vector_store %arg4[%c0_8, %c0_9], %23 {strides = array<i32>} : memref<2x128xf32, #tpu.memory_space<vmem>>, vector<2x128xf32>,
    %c0_10 = arith.constant 0 : index
    %c0_11 = arith.constant 0 : index
    %25 = vector.load %arg5[%c0_10, %c0_11] : memref<2x128xf32, #tpu.memory_space<vmem>>, vector<2x128xf32>
    %26 = arith.mulf %14, %14 : vector<8x128xf32>
    "tpu.trace_start"() <{level = 10 : i32, message = "nb,nd->bd"}> : () -> ()
    %cst_12 = arith.constant dense<0.000000e+00> : vector<2x128xf32>
    %27 = tpu.matmul %20, %26, %cst_12 {dimension_numbers = #tpu.dot_dimension_numbers<[0], [0], [1], [1], [0, 1, 1, 1], [], []>} : vector<8x2xf32>, vector<8x128xf32>, vector<2x128xf32> -> vector<2x128xf32>
    "tpu.trace_stop"() : () -> ()
    %28 = arith.addf %25, %27 : vector<2x128xf32>
    %c0_13 = arith.constant 0 : index
    %c0_14 = arith.constant 0 : index
    %29 = vector.load %arg5[%c0_13, %c0_14] : memref<2x128xf32, #tpu.memory_space<vmem>>, vector<2x128xf32>
    tpu.vector_store %arg5[%c0_13, %c0_14], %28 {strides = array<i32>} : memref<2x128xf32, #tpu.memory_space<vmem>>, vector<2x128xf32>,
    return
  }
  func.func @transform_0(%arg0: i32, %arg1: i32) -> (i32, i32) {
    %c0_i32 = arith.constant 0 : i32
    %c0_i32_0 = arith.constant 0 : i32
    return %arg1, %c0_i32 : i32, i32
  }
  func.func @transform_1(%arg0: i32, %arg1: i32) -> (i32, i32) {
    %c0_i32 = arith.constant 0 : i32
    return %arg1, %arg0 : i32, i32
  }
  func.func @transform_2(%arg0: i32, %arg1: i32) -> (i32, i32) {
    %c0_i32 = arith.constant 0 : i32
    %c0_i32_0 = arith.constant 0 : i32
    return %c0_i32, %arg0 : i32, i32
  }
  func.func @transform_3(%arg0: i32, %arg1: i32) -> (i32, i32) {
    %c0_i32 = arith.constant 0 : i32
    %c0_i32_0 = arith.constant 0 : i32
    return %c0_i32, %arg0 : i32, i32
  }
}

</mosaic_0001>

<bundles_post_ra>
// kernel: tpu_custom_call.1
= control target key start
LH: loop header
LB: loop body
LE: loop exit
PB: predicated region body
PF: predicated region fallthrough
CT: control target
= control target key end

     0   :  { %9 = vsyncpa [#allocation3], 0  ;;  %s251_s0 = inlined_call_operand.vmem [shape: s32[8,1], index: 0, kind: input, shape index: {}]   ;;  %s252_s1 = inlined_call_operand.vmem [shape: f32[8,128], index: 1, kind: input, shape index: {}]   ;;  %s253_s2 = inlined_call_operand.hbm [shape: f32[2,128], index: 2, kind: output, shape index: {0}]   ;;  %s254_s3 = inlined_call_operand.hbm [shape: f32[2,128], index: 3, kind: output, shape index: {1}]  }
   0x1   :  { %v33_v0 = vld [vmem:[%s251_s0] sm:$0xff] }
   0x2   :  { %10 = vsyncpa [#allocation5], 0  ;;  %v215_v1 = vmov 0   ;;  %v216_v2 = vmov 0.0   ;;  %v21_v3 = vld [vmem:[%s252_s1] sm:$0xff]  ;;  %v31_v5 = vlaneseq  ;;  %vm73_vm1 = vcmask 64512  }
   0x3   :  { %162 = vset.pattern.permute.xlu0 %v215_v1  ;;  %19 = vst [vmem:[#allocation2] sm:$0x3] %v216_v2  ;;  %92 = vmatpush.msra.mxu0 %v21_v3  ;;  %v100_v4 = vmul.f32 %v21_v3, %v21_v3  ;;  %s217_s0 = smov [#allocation2]   ;;  %s130_s1 = sshll.u32 %s253_s2, 4  ;;  %s131_s1 = int_to_ptr.hbm [resolvable:$true] %s130_s1 }
   0x4   :  { %35 = vperm.xlu0 %162, %v33_v0   ;;  %20 = vst [vmem:[#allocation4] sm:$0x3] %v216_v2  ;;  %v32_v6 = vand.u32 127, %v31_v5  ;;  %s128_s16 = sshll.u32 %s217_s0, 4  ;;  %s218_s19 = smov [#allocation4]   ;;  %s129_s16 = int_to_ptr.vmem [resolvable:$true] %s128_s16 }
   0x5   :  { %116 = vmatpush.msra.mxu1 %v100_v4  ;;  %s139_s20 = sshll.u32 %s218_s19, 4  ;;  %s141_s23 = sshll.u32 %s254_s3, 4  ;;  %s140_s20 = int_to_ptr.vmem [resolvable:$true] %s139_s20  ;;  %s142_s23 = int_to_ptr.hbm [resolvable:$true] %s141_s23 }
   0xa   :  { %v40_v10 = vld [vmem:[#allocation2] sm:$0x3] }
   0xb   :  { %v99_v11 = vld [vmem:[#allocation4] sm:$0x3] }
  0x76   :  { %v36_v7 = vpop.permute.xlu0 %35 }
  0x77   :  { %vm37_vm0 = vcmp.eq.s32.totalorder %v36_v7, %v32_v6 }
  0x78   :  { %v155_v8 = vsel %vm37_vm0, 1.0, %v216_v2 }
  0x79   :  { %41 = vxpose.xlu0.b32.start.end [1/1] (short) (narrow) %v155_v8, 8 }
 0x11d   :  { %v57_v9 = vpop.trf.xlu0 }
 0x11e   :  { %156 = vmatmul.msk.f32.vlgmr.msra.gmra.mxu0 %vm73_vm1, %v57_v9  ;;  %157 = vmatmul.msk.f32.vlgmr.msra.gmra.mxu1 %vm73_vm1, %v57_v9 }
 0x19b   :  { %v94_v12 = vpop.f32.mrf.mxu0  ;;  %v118_v13 = vpop.f32.mrf.mxu1 }
 0x19c   :  { %v97_v14 = vadd.f32 %v94_v12, %v40_v10  ;;  %v121_v15 = vadd.f32 %v118_v13, %v99_v11 }
 0x19e   :  { %98 = vst [vmem:[#allocation2] sm:$0x3] %v97_v14 }
 0x19f   :  { %122 = vst [vmem:[#allocation4] sm:$0x3] %v121_v15  ;;  %133 = dma.vmem_to_hbm [thread:$0]  %s129_s16, 32, %s131_s1, [#allocation3]  }
 0x1a0   :  { %144 = dma.vmem_to_hbm [thread:$0]  %s140_s20, 32, %s142_s23, [#allocation5]  }
 0x1a1   :  { %211 = dma.done.wait [#allocation3], 32  }
 0x1a2   :  { %212 = vsyncadd [#allocation3], 4294967264 }
 0x1a3   :  { %213 = dma.done.wait [#allocation5], 32  }
 0x1a4   :  { %214 = vsyncadd [#allocation5], 4294967264 }
 0x1a5   :  { %153 = vsyncpa [#allocation3], 1 }
 0x1a6   :  { %154 = vsyncpa [#allocation5], 1 }

</bundles_post_ra>
